<compile_context>
chip_gen: v5e
topology: v5e:2x2
jax: 0.10.0
libtpu: 0.0.40
codegen_flags: <defaults>
</compile_context>

<pallas_src>
import functools

import jax
import jax.numpy as jnp
from jax import lax
from jax.experimental import pallas as pl
from jax.experimental.pallas import tpu as pltpu


_INV_SQRT2 = 0.7071067811865476


def _gelu_f32(x, approximate):
    if approximate:
        # tanh approximation -> single EUP push, frees the VALU slot.
        return jax.nn.gelu(x, approximate=True)
    # PyTorch nn.GELU() default: exact (erf-based) GELU.
    # TODO(synk): if the erf VPU polynomial shows up as the binding slot on
    # v6e/v7x profiles, switch callers to approximate_gelu=True or an
    # exp-based (EUP) erf form.
    return 0.5 * x * (1.0 + lax.erf(x * jnp.float32(_INV_SQRT2)))


# ----------------------------- kernels --------------------------------------


def _v2v_kernel_resident(x_ref, w1_ref, b1_ref, w2_ref, b2_ref, o_ref, *,
                         approximate_gelu):
    # Cast activations to bf16 in-kernel (cheap VPU op hidden under the MXU).
    x = x_ref[...].astype(jnp.bfloat16)

    # fc[0]: Linear(D, D) -- bf16 MXU operands, f32 accumulation.
    h = jnp.dot(x, w1_ref[...], preferred_element_type=jnp.float32)
    h = h + b1_ref[...].astype(jnp.float32)

    # fc[1]: GELU (exact by default, matching torch.nn.GELU()).
    h = _gelu_f32(h, approximate_gelu)

    # fc[2]: Linear(D, D) -- feed bf16 h straight into the MXU (no VMEM
    # round-trip; let Mosaic manage the vreg lifetime).
    y = jnp.dot(h.astype(jnp.bfloat16), w2_ref[...],
                preferred_element_type=jnp.float32)
    y = y + b2_ref[...].astype(jnp.float32)
    o_ref[...] = y.astype(o_ref.dtype)


def _v2v_kernel_hidden_tiled(x_ref, w1_ref, b1_ref, w2_ref, b2_ref, o_ref,
                             acc_ref, *, approximate_gelu):
    # Grid: (batch_tile, hidden_tile). Hidden axis is a reduction for the
    # second matmul, accumulated in f32 VMEM scratch.
    h_idx = pl.program_id(1)

    @pl.when(h_idx == 0)
    def _():
        acc_ref[...] = jnp.zeros_like(acc_ref)

    x = x_ref[...].astype(jnp.bfloat16)
    h = jnp.dot(x, w1_ref[...], preferred_element_type=jnp.float32)
    h = h + b1_ref[...].astype(jnp.float32)
    h = _gelu_f32(h, approximate_gelu)
    acc_ref[...] += jnp.dot(h.astype(jnp.bfloat16), w2_ref[...],
                            preferred_element_type=jnp.float32)

    @pl.when(h_idx == pl.num_programs(1) - 1)
    def _():
        y = acc_ref[...] + b2_ref[...].astype(jnp.float32)
        o_ref[...] = y.astype(o_ref.dtype)


# --------------------------- tiling heuristics -------------------------------


def _vmem_capacity_bytes():
    try:
        return int(pltpu.get_tpu_info().vmem_capacity_bytes)
    except Exception:
        return 64 << 20  # conservative fallback: v7x per-TC VMEM


def _default_block_batch(B):
    # Single-TC chips (v5e/v6e) gain nothing from splitting small batches;
    # big batches use large tiles (amortize per-step overhead, fill the MXU).
    if B >= 1024:
        return 512
    if B >= 512:
        return 256
    return B


def _default_block_hidden(D, budget_bytes):
    # Largest multiple of 128 such that the double-buffered bf16 w1-column +
    # w2-row tiles stay under ~1/3 of the VMEM budget.
    per_col = 2 * D * 2 * 2  # (w1 col + w2 row) * bf16 * double buffer
    bh = (budget_bytes // 3) // max(per_col, 1)
    bh = (bh // 128) * 128
    return int(max(128, min(D, bh)))


# ------------------------------ wrapper --------------------------------------


def v2v_forward(x, w1, b1, w2, b2, *, block_batch=None, block_hidden=None,
                approximate_gelu=False, out_dtype=jnp.float32):
    """V2V forward: Linear(D, D) -> GELU -> Linear(D, D).

    x : [B, D] activations (any float dtype; cast to bf16 inside the kernel).
    w1, w2 : [D, D] weights in (in, out) layout, ideally already bf16.
    b1, b2 : [1, D] biases (added in f32 after accumulation).

    NOTE: for best lane utilization D should be a multiple of 128.
    """
    B, D = x.shape
    if block_batch is None:
        block_batch = _default_block_batch(B)
    block_batch = min(block_batch, B)

    # No-op casts if prepare_v2v_weights() was used (the recommended path).
    w1 = w1.astype(jnp.bfloat16)
    w2 = w2.astype(jnp.bfloat16)
    b1 = b1.astype(jnp.float32)
    b2 = b2.astype(jnp.float32)

    cap = _vmem_capacity_bytes()
    budget = cap - (12 << 20)  # headroom for Mosaic internal scratch

    resident_weight_bytes = 2 * D * D * 2  # bf16 w1 + w2
    use_hidden_tiling = (block_hidden is not None
                         or resident_weight_bytes > budget // 3)

    x_bytes = x.dtype.itemsize
    o_bytes = jnp.dtype(out_dtype).itemsize
    num_batch_tiles = pl.cdiv(B, block_batch)

    cost = pl.CostEstimate(
        flops=2 * 2 * B * D * D,            # two DxD matmuls over the batch
        transcendentals=B * D,              # one erf/tanh per hidden element
        bytes_accessed=(B * D * x_bytes + 2 * D * D * 2 + 2 * D * 4
                        + B * D * o_bytes),
    )
    kernel_kw = dict(approximate_gelu=approximate_gelu)

    if not use_hidden_tiling:
        # ---------- resident-weight path: weights stay in VMEM -------------
        invariant = pl.Buffered(1)  # single VMEM copy of grid-invariant operands
        est = (2 * block_batch * D * x_bytes      # x tile, double buffered
               + 2 * block_batch * D * o_bytes    # out tile, double buffered
               + 2 * D * D * 2                    # w1 + w2, bf16, single copy
               + 2 * D * 4)                       # biases
        vmem_limit = int(min(budget, max(2 * est + (8 << 20), 32 << 20)))

        grid_spec = pltpu.PrefetchScalarGridSpec(
            num_scalar_prefetch=0,
            grid=(num_batch_tiles,),
            in_specs=[
                pl.BlockSpec((block_batch, D), lambda i: (i, 0)),                 # x
                pl.BlockSpec((D, D), lambda i: (0, 0), pipeline_mode=invariant),  # w1
                pl.BlockSpec((1, D), lambda i: (0, 0), pipeline_mode=invariant),  # b1
                pl.BlockSpec((D, D), lambda i: (0, 0), pipeline_mode=invariant),  # w2
                pl.BlockSpec((1, D), lambda i: (0, 0), pipeline_mode=invariant),  # b2
            ],
            out_specs=pl.BlockSpec((block_batch, D), lambda i: (i, 0)),
        )
        kernel = functools.partial(_v2v_kernel_resident, **kernel_kw)
        dim_sem = ("parallel",)
    else:
        # ---------- hidden-tiled path: stream weight tiles ------------------
        if block_hidden is None:
            block_hidden = _default_block_hidden(D, budget)
        block_hidden = min(block_hidden, D)
        num_hidden_tiles = pl.cdiv(D, block_hidden)

        est = (2 * block_batch * D * x_bytes
               + 2 * block_batch * D * o_bytes
               + block_batch * D * 4                        # f32 accumulator
               + 2 * 2 * D * block_hidden * 2               # w1 col + w2 row tiles, dbl-buf
               + 2 * block_hidden * 4 + D * 4)              # bias tiles
        vmem_limit = int(min(budget, max(2 * est + (8 << 20), 32 << 20)))

        grid_spec = pltpu.PrefetchScalarGridSpec(
            num_scalar_prefetch=0,
            grid=(num_batch_tiles, num_hidden_tiles),
            in_specs=[
                pl.BlockSpec((block_batch, D), lambda i, h: (i, 0)),       # x (revisited)
                pl.BlockSpec((D, block_hidden), lambda i, h: (0, h)),      # w1 col tile
                pl.BlockSpec((1, block_hidden), lambda i, h: (0, h)),      # b1 tile
                pl.BlockSpec((block_hidden, D), lambda i, h: (h, 0)),      # w2 row tile
                pl.BlockSpec((1, D), lambda i, h: (0, 0),
                             pipeline_mode=pl.Buffered(1)),                # b2
            ],
            out_specs=pl.BlockSpec((block_batch, D), lambda i, h: (i, 0)),
            scratch_shapes=[pltpu.VMEM((block_batch, D), jnp.float32)],
        )
        kernel = functools.partial(_v2v_kernel_hidden_tiled, **kernel_kw)
        dim_sem = ("parallel", "arbitrary")

    return pl.pallas_call(
        kernel,
        out_shape=jax.ShapeDtypeStruct((B, D), out_dtype),
        grid_spec=grid_spec,
        compiler_params=pltpu.CompilerParams(
            dimension_semantics=dim_sem,
            vmem_limit_bytes=vmem_limit,
        ),
        cost_estimate=cost,
    )(x, w1, b1, w2, b2)


# ------------------------- params / references -------------------------------


def init_v2v_params(key, input_dim):
    """Shapes matching torch.nn.Linear(input_dim, input_dim) x2.

    PyTorch Linear stores weight as [out, in]; we return the transpose
    [in, out] so the kernel computes x @ W + b.
    """
    k1, k2, k3, k4 = jax.random.split(key, 4)
    bound = 1.0 / float(input_dim) ** 0.5
    w1 = jax.random.uniform(k1, (input_dim, input_dim), jnp.float32, -bound, bound)
    b1 = jax.random.uniform(k2, (1, input_dim), jnp.float32, -bound, bound)
    w2 = jax.random.uniform(k3, (input_dim, input_dim), jnp.float32, -bound, bound)
    b2 = jax.random.uniform(k4, (1, input_dim), jnp.float32, -bound, bound)
    return w1, b1, w2, b2


def prepare_v2v_weights(w1, w2):
    """One-time bf16 conversion, hoisted out of the per-call serving path."""
    return w1.astype(jnp.bfloat16), w2.astype(jnp.bfloat16)


def v2v_reference_f32(x, w1, b1, w2, b2):
    h = x @ w1 + b1
    h = jax.nn.gelu(h, approximate=False)
    return h @ w2 + b2


def v2v_reference_bf16(x, w1, b1, w2, b2):
    # Mirrors the kernel's precision recipe: bf16 MXU operands, f32 accumulation.
    xb = x.astype(jnp.bfloat16)
    w1b = w1.astype(jnp.bfloat16)
    w2b = w2.astype(jnp.bfloat16)
    h = jnp.dot(xb, w1b, preferred_element_type=jnp.float32) + b1
    h = jax.nn.gelu(h, approximate=False)
    hb = h.astype(jnp.bfloat16)
    return jnp.dot(hb, w2b, preferred_element_type=jnp.float32) + b2


if __name__ == "__main__":
    key = jax.random.PRNGKey(0)
    k_x1, k_p1, k_x2, k_p2 = jax.random.split(key, 4)

    # ---- Test 1: resident-weight path (small D, single batch tile) ---------
    B1, D1 = 64, 128
    x1 = jax.random.normal(k_x1, (B1, D1), dtype=jnp.float32)
    w1, b1, w2, b2 = init_v2v_params(k_p1, D1)
    w1b, w2b = prepare_v2v_weights(w1, w2)

    out1 = jax.block_until_ready(v2v_forward(x1, w1b, b1, w2b, b2))
    ref1_bf = v2v_reference_bf16(x1, w1, b1, w2, b2)
    ref1_f32 = v2v_reference_f32(x1, w1, b1, w2, b2)
    assert out1.shape == (B1, D1)
    assert jnp.allclose(out1, ref1_bf, atol=5e-3, rtol=5e-3), "resident path vs bf16 ref"
    assert jnp.allclose(out1, ref1_f32, atol=6e-2, rtol=6e-2), "resident path vs f32 ref"

    # ---- Test 2: hidden-tiled path (forced small to exercise accumulation) -
    B2, D2 = 32, 256
    x2 = jax.random.normal(k_x2, (B2, D2), dtype=jnp.float32)
    w1, b1, w2, b2 = init_v2v_params(k_p2, D2)
    w1b, w2b = prepare_v2v_weights(w1, w2)

    out2 = jax.block_until_ready(
        v2v_forward(x2, w1b, b1, w2b, b2, block_hidden=128))
    ref2_bf = v2v_reference_bf16(x2, w1, b1, w2, b2)
    ref2_f32 = v2v_reference_f32(x2, w1, b1, w2, b2)
    assert out2.shape == (B2, D2)
    assert jnp.allclose(out2, ref2_bf, atol=5e-3, rtol=5e-3), "tiled path vs bf16 ref"
    assert jnp.allclose(out2, ref2_f32, atol=6e-2, rtol=6e-2), "tiled path vs f32 ref"

    print("KERNEL_OK")
</pallas_src>

<mosaic_0001>
module attributes {stable_mosaic.version = 11 : i64} {
  func.func @_v2v_kernel_resident(%arg0: i32, %arg1: memref<64x128xf32, #tpu.memory_space<vmem>>, %arg2: memref<128x128xbf16, #tpu.memory_space<vmem>>, %arg3: memref<1x128xf32, #tpu.memory_space<vmem>>, %arg4: memref<128x128xbf16, #tpu.memory_space<vmem>>, %arg5: memref<1x128xf32, #tpu.memory_space<vmem>>, %arg6: memref<64x128xf32, #tpu.memory_space<vmem>>) attributes {dimension_semantics = [#tpu.dimension_semantics<parallel>], iteration_bounds = array<i64: 1>, scalar_prefetch = 0 : i64, scratch_operands = 0 : i64, tpu.core_type = #tpu.core_type<tc>, window_params = [{transform_indices = @transform_0, window_bounds = array<i64: 64, 128>}, {pipeline_mode = #tpu.pipeline_mode<synchronous>, transform_indices = @transform_1, window_bounds = array<i64: 128, 128>}, {pipeline_mode = #tpu.pipeline_mode<synchronous>, transform_indices = @transform_2, window_bounds = array<i64: 1, 128>}, {pipeline_mode = #tpu.pipeline_mode<synchronous>, transform_indices = @transform_3, window_bounds = array<i64: 128, 128>}, {pipeline_mode = #tpu.pipeline_mode<synchronous>, transform_indices = @transform_4, window_bounds = array<i64: 1, 128>}, {transform_indices = @transform_5, window_bounds = array<i64: 64, 128>}]} {
    %c0 = arith.constant 0 : index
    %c0_0 = arith.constant 0 : index
    %0 = vector.load %arg1[%c0, %c0_0] : memref<64x128xf32, #tpu.memory_space<vmem>>, vector<64x128xf32>
    %1 = arith.truncf %0 : vector<64x128xf32> to vector<64x128xbf16>
    %c0_1 = arith.constant 0 : index
    %c0_2 = arith.constant 0 : index
    %2 = vector.load %arg2[%c0_1, %c0_2] : memref<128x128xbf16, #tpu.memory_space<vmem>>, vector<128x128xbf16>
    %cst = arith.constant dense<0.000000e+00> : vector<64x128xf32>
    %3 = tpu.matmul %1, %2, %cst {dimension_numbers = #tpu.dot_dimension_numbers<[1], [0], [0], [1], [0, 0, 1, 1], [], []>} : vector<64x128xbf16>, vector<128x128xbf16>, vector<64x128xf32> -> vector<64x128xf32>
    %c0_3 = arith.constant 0 : index
    %c0_4 = arith.constant 0 : index
    %4 = vector.load %arg3[%c0_3, %c0_4] : memref<1x128xf32, #tpu.memory_space<vmem>>, vector<1x128xf32>
    %5 = vector.broadcast %4 : vector<1x128xf32> to vector<64x128xf32>
    %6 = arith.addf %3, %5 : vector<64x128xf32>
    %cst_5 = arith.constant 5.000000e-01 : f32
    %7 = vector.broadcast %cst_5 : f32 to vector<64x128xf32>
    %8 = arith.mulf %7, %6 : vector<64x128xf32>
    %cst_6 = arith.constant 0.707106769 : f32
    %9 = vector.broadcast %cst_6 : f32 to vector<64x128xf32>
    %10 = arith.mulf %6, %9 : vector<64x128xf32>
    %11 = math.erf %10 : vector<64x128xf32>
    %cst_7 = arith.constant 1.000000e+00 : f32
    %12 = vector.broadcast %cst_7 : f32 to vector<64x128xf32>
    %13 = arith.addf %12, %11 : vector<64x128xf32>
    %14 = arith.mulf %8, %13 : vector<64x128xf32>
    %15 = arith.truncf %14 : vector<64x128xf32> to vector<64x128xbf16>
    %c0_8 = arith.constant 0 : index
    %c0_9 = arith.constant 0 : index
    %16 = vector.load %arg4[%c0_8, %c0_9] : memref<128x128xbf16, #tpu.memory_space<vmem>>, vector<128x128xbf16>
    %cst_10 = arith.constant dense<0.000000e+00> : vector<64x128xf32>
    %17 = tpu.matmul %15, %16, %cst_10 {dimension_numbers = #tpu.dot_dimension_numbers<[1], [0], [0], [1], [0, 0, 1, 1], [], []>} : vector<64x128xbf16>, vector<128x128xbf16>, vector<64x128xf32> -> vector<64x128xf32>
    %c0_11 = arith.constant 0 : index
    %c0_12 = arith.constant 0 : index
    %18 = vector.load %arg5[%c0_11, %c0_12] : memref<1x128xf32, #tpu.memory_space<vmem>>, vector<1x128xf32>
    %19 = vector.broadcast %18 : vector<1x128xf32> to vector<64x128xf32>
    %20 = arith.addf %17, %19 : vector<64x128xf32>
    %c0_13 = arith.constant 0 : index
    %c0_14 = arith.constant 0 : index
    %21 = vector.load %arg6[%c0_13, %c0_14] : memref<64x128xf32, #tpu.memory_space<vmem>>, vector<64x128xf32>
    tpu.vector_store %arg6[%c0_13, %c0_14], %20 {strides = array<i32>} : memref<64x128xf32, #tpu.memory_space<vmem>>, vector<64x128xf32>,
    return
  }
  func.func @transform_0(%arg0: i32) -> (i32, i32) {
    %c0_i32 = arith.constant 0 : i32
    %c0_i32_0 = arith.constant 0 : i32
    return %arg0, %c0_i32 : i32, i32
  }
  func.func @transform_1(%arg0: i32) -> (i32, i32) {
    %c0_i32 = arith.constant 0 : i32
    %c0_i32_0 = arith.constant 0 : i32
    %c0_i32_1 = arith.constant 0 : i32
    return %c0_i32, %c0_i32_0 : i32, i32
  }
  func.func @transform_2(%arg0: i32) -> (i32, i32) {
    %c0_i32 = arith.constant 0 : i32
    %c0_i32_0 = arith.constant 0 : i32
    %c0_i32_1 = arith.constant 0 : i32
    return %c0_i32, %c0_i32_0 : i32, i32
  }
  func.func @transform_3(%arg0: i32) -> (i32, i32) {
    %c0_i32 = arith.constant 0 : i32
    %c0_i32_0 = arith.constant 0 : i32
    %c0_i32_1 = arith.constant 0 : i32
    return %c0_i32, %c0_i32_0 : i32, i32
  }
  func.func @transform_4(%arg0: i32) -> (i32, i32) {
    %c0_i32 = arith.constant 0 : i32
    %c0_i32_0 = arith.constant 0 : i32
    %c0_i32_1 = arith.constant 0 : i32
    return %c0_i32, %c0_i32_0 : i32, i32
  }
  func.func @transform_5(%arg0: i32) -> (i32, i32) {
    %c0_i32 = arith.constant 0 : i32
    %c0_i32_0 = arith.constant 0 : i32
    return %arg0, %c0_i32 : i32, i32
  }
}

</mosaic_0001>

<bundles_post_ra>
// kernel: tpu_custom_call.1
= control target key start
LH: loop header
LB: loop body
LE: loop exit
PB: predicated region body
PF: predicated region fallthrough
CT: control target
= control target key end

     0   :  { %10 = vsyncpa [#allocation3], 0  ;;  %s1220_s0 = inlined_call_operand.hbm [shape: f32[64,128], index: 0, kind: input, shape index: {}]   ;;  %s1221_s1 = inlined_call_operand.hbm [shape: bf16[128,128], index: 1, kind: input, shape index: {}]   ;;  %s1222_s2 = inlined_call_operand.vmem [shape: f32[1,128], index: 2, kind: input, shape index: {}]   ;;  %s1223_s3 = inlined_call_operand.hbm [shape: bf16[128,128], index: 3, kind: input, shape index: {}]   ;;  %s1224_s4 = inlined_call_operand.vmem [shape: f32[1,128], index: 4, kind: input, shape index: {}]   ;;  %s1225_s5 = inlined_call_operand.hbm [shape: f32[64,128], index: 5, kind: output, shape index: {}]  }
   0x1   :  { %11 = vsyncpa [#allocation6], 0  ;;  %s30_s20 = sshll.u32 %s1221_s1, 4  ;;  %s31_s20 = int_to_ptr.hbm [resolvable:$true] %s30_s20 }
   0x2   :  { %12 = vsyncpa [#allocation4], 0  ;;  %s890_s21 = smov [#allocation5]   ;;  %s17_s25 = sshll.u32 %s1220_s0, 4  ;;  %s18_s25 = int_to_ptr.hbm [resolvable:$true] %s17_s25 }
   0x3   :  { %s32_s22 = sshll.u32 %s890_s21, 4  ;;  %s891_s26 = smov 64   ;;  %s33_s22 = int_to_ptr.vmem [resolvable:$true] %s32_s22 }
   0x4   :  { %s892_s27 = smov 4   ;;  %s893_s28 = smov [#allocation2]  }
   0x5   :  { %38 = dma.hbm_to_vmem [thread:$0]  %s31_s20, 1024, %s33_s22, [#allocation6], %s891_s26, %s891_s26, %s892_s27  }
   0x6   :  { %s19_s29 = sshll.u32 %s893_s28, 4  ;;  %s894_s30 = smov 128   ;;  %s20_s29 = int_to_ptr.vmem [resolvable:$true] %s19_s29 }
   0x7   :  { %s895_s6 = smov 8   ;;  %s45_s8 = sshll.u32 %s1223_s3, 4  ;;  %s46_s8 = int_to_ptr.hbm [resolvable:$true] %s45_s8 }
   0x8   :  { %25 = dma.hbm_to_vmem [thread:$0]  %s18_s25, 1024, %s20_s29, [#allocation3], %s894_s30, %s894_s30, %s895_s6  }
   0x9   :  { %s896_s9 = smov [#allocation7]  }
   0xa   :  { %s47_s0 = sshll.u32 %s896_s9, 4  ;;  %s48_s0 = int_to_ptr.vmem [resolvable:$true] %s47_s0 }
   0xb   :  { %53 = dma.hbm_to_vmem [thread:$0]  %s46_s8, 1024, %s48_s0, [#allocation6], %s891_s26, %s891_s26, %s892_s27  }
   0xc   :  { %884 = dma.done.wait [#allocation3], 1024  }
   0xd   :  { %885 = vsyncadd [#allocation3], 4294966272 }
   0xe   :  { %886 = dma.done.wait [#allocation6], 2048  }
   0xf   :  { %887 = vsyncadd [#allocation6], 4294965248  ;;  %v737_v0 = vld [vmem:[#allocation5 + $0x38] sm:$0xff]  ;;  %v736_v1 = vld [vmem:[#allocation5 + $0x30] sm:$0xff]  ;;  %s644_s15 = sshll.u32 %s1225_s5, 4  ;;  %s645_s15 = int_to_ptr.hbm [resolvable:$true] %s644_s15 }
  0x10   :  { %148 = vmatpush.bf16.msra.mxu0 %v737_v0  ;;  %746 = vmatpush.bf16.msra.mxu2 %v737_v0  ;;  %v735_v2 = vld [vmem:[#allocation5 + $0x28] sm:$0xff]  ;;  %v734_v3 = vld [vmem:[#allocation5 + $0x20] sm:$0xff]  ;;  %v733_v4 = vld [vmem:[#allocation5 + $0x18] sm:$0xff] }
  0x11   :  { %v732_v5 = vld [vmem:[#allocation5 + $0x10] sm:$0xff]  ;;  %v731_v6 = vld [vmem:[#allocation5 + $0x8] sm:$0xff]  ;;  %v730_v7 = vld [vmem:[#allocation5] sm:$0xff] }
  0x12   :  { %v68_v8 = vld [vmem:[#allocation2] sm:$0xff]  ;;  %v69_v9 = vld [vmem:[#allocation2 + $0x8] sm:$0xff]  ;;  %v70_v14 = vld [vmem:[#allocation2 + $0x10] sm:$0xff] }
  0x13   :  { %v72_v10 = vld [vmem:[#allocation2 + $0x20] sm:$0xff]  ;;  %v73_v11 = vld [vmem:[#allocation2 + $0x28] sm:$0xff]  ;;  %v76_v12 = vpack.c.bf16 %v69_v9, %v68_v8  ;;  %v71_v15 = vld [vmem:[#allocation2 + $0x18] sm:$0xff] }
  0x14   :  { %149 = vmatpush.bf16.msra.mxu0 %v736_v1  ;;  %747 = vmatpush.bf16.msra.mxu2 %v736_v1  ;;  %v78_v13 = vpack.c.bf16 %v73_v11, %v72_v10  ;;  %v74_v16 = vld [vmem:[#allocation2 + $0x30] sm:$0xff]  ;;  %v75_v17 = vld [vmem:[#allocation2 + $0x38] sm:$0xff]  ;;  %v77_v18 = vpack.c.bf16 %v71_v15, %v70_v14  ;;  %v943_v20 = vld [vmem:[%s1222_s2] ss:$0 sm:$0xff] }
  0x15   :  { %v79_v19 = vpack.c.bf16 %v75_v17, %v74_v16  ;;  %v745_v23 = vld [vmem:[#allocation7 + $0x38] sm:$0xff]  ;;  %v744_v26 = vld [vmem:[#allocation7 + $0x30] sm:$0xff]  ;;  %v743_v34 = vld [vmem:[#allocation7 + $0x28] sm:$0xff] }
  0x16   :  { %601 = vmatpush.bf16.msra.mxu1 %v745_v23  ;;  %754 = vmatpush.bf16.msra.mxu3 %v745_v23  ;;  %v742_v43 = vld [vmem:[#allocation7 + $0x20] sm:$0xff]  ;;  %v741_v55 = vld [vmem:[#allocation7 + $0x18] sm:$0xff]  ;;  %v739_v15 = vld [vmem:[#allocation7 + $0x8] sm:$0xff] }
  0x18   :  { %150 = vmatpush.bf16.msra.mxu0 %v735_v2  ;;  %748 = vmatpush.bf16.msra.mxu2 %v735_v2  ;;  %v740_v2 = vld [vmem:[#allocation7 + $0x10] sm:$0xff] }
  0x1a   :  { %602 = vmatpush.bf16.msra.mxu1 %v744_v26  ;;  %755 = vmatpush.bf16.msra.mxu3 %v744_v26 }
  0x1c   :  { %151 = vmatpush.bf16.msra.mxu0 %v734_v3  ;;  %749 = vmatpush.bf16.msra.mxu2 %v734_v3 }
  0x1e   :  { %603 = vmatpush.bf16.msra.mxu1 %v743_v34  ;;  %756 = vmatpush.bf16.msra.mxu3 %v743_v34 }
  0x20   :  { %152 = vmatpush.bf16.msra.mxu0 %v733_v4  ;;  %750 = vmatpush.bf16.msra.mxu2 %v733_v4 }
  0x22   :  { %604 = vmatpush.bf16.msra.mxu1 %v742_v43  ;;  %757 = vmatpush.bf16.msra.mxu3 %v742_v43 }
  0x24   :  { %153 = vmatpush.bf16.msra.mxu0 %v732_v5  ;;  %751 = vmatpush.bf16.msra.mxu2 %v732_v5 }
  0x26   :  { %605 = vmatpush.bf16.msra.mxu1 %v741_v55  ;;  %758 = vmatpush.bf16.msra.mxu3 %v741_v55 }
  0x28   :  { %154 = vmatpush.bf16.msra.mxu0 %v731_v6  ;;  %752 = vmatpush.bf16.msra.mxu2 %v731_v6 }
  0x2a   :  { %606 = vmatpush.bf16.msra.mxu1 %v740_v2  ;;  %759 = vmatpush.bf16.msra.mxu3 %v740_v2 }
  0x2c   :  { %155 = vmatpush.bf16.msra.mxu0 %v730_v7  ;;  %753 = vmatpush.bf16.msra.mxu2 %v730_v7 }
  0x2e   :  { %607 = vmatpush.bf16.msra.mxu1 %v739_v15  ;;  %760 = vmatpush.bf16.msra.mxu3 %v739_v15 }
  0x2f   :  { %156 = vmatmul.bf16.vlgmr.msra.gmra.mxu0 %v76_v12  ;;  %166 = vmatmul.bf16.vlgmr.msra.gmra.mxu2 %v78_v13 }
  0x3f   :  { %161 = vmatmul.bf16.gmra.mxu0 %v77_v18  ;;  %171 = vmatmul.bf16.gmra.mxu2 %v79_v19 }
  0xac   :  { %v157_v21 = vpop.f32.mrf.mxu0 }
  0xad   :  { %v946_v22 = vadd.f32 %v943_v20, %v157_v21 }
  0xaf   :  { %v949_v24 = vmul.f32 0.70710677, %v946_v22 }
  0xb1   :  { %v193_v25 = vmul.f32 %v949_v24, %v949_v24 }
  0xb2   :  { %v167_v27 = vpop.f32.mrf.mxu2 }
  0xb3   :  { %v953_v28 = vmin.f32 %v193_v25, 16.0  ;;  %v956_v29 = vadd.f32 %v943_v20, %v167_v27 }
  0xb4   :  { %v159_v30 = vpop.f32.mrf.mxu0 }
  0xb5   :  { %v195_v31 = vmul.f32 2.1237322e-06, %v953_v28  ;;  %v960_v32 = vmul.f32 0.70710677, %v956_v29  ;;  %v963_v33 = vadd.f32 %v943_v20, %v159_v30  ;;  %v206_v35 = vmul.f32 3.8918573e-05, %v953_v28 }
  0xb6   :  { %v738_v30 = vld [vmem:[#allocation7] sm:$0xff] }
  0xb7   :  { %v196_v36 = vadd.f32 0.00028619796, %v195_v31  ;;  %v353_v37 = vmul.f32 %v960_v32, %v960_v32  ;;  %v969_v38 = vmul.f32 0.70710677, %v963_v33  ;;  %v207_v39 = vadd.f32 0.001143296, %v206_v35  ;;  %608 = vmatpush.bf16.msra.mxu1 %v738_v30  ;;  %761 = vmatpush.bf16.msra.mxu3 %v738_v30 }
  0xb9   :  { %v197_v40 = vmul.f32 %v196_v36, %v953_v28  ;;  %v972_v41 = vmin.f32 %v353_v37, 16.0  ;;  %v233_v42 = vmul.f32 %v969_v38, %v969_v38  ;;  %v208_v45 = vmul.f32 %v207_v39, %v953_v28 }
  0xba   :  { %v169_v44 = vpop.f32.mrf.mxu2 }
  0xbb   :  { %v198_v46 = vadd.f32 0.0036580483, %v197_v40  ;;  %v355_v47 = vmul.f32 2.1237322e-06, %v972_v41  ;;  %v978_v48 = vmin.f32 %v233_v42, 16.0  ;;  %v981_v49 = vadd.f32 %v943_v20, %v169_v44 }
  0xbc   :  { %v162_v50 = vpop.f32.mrf.mxu0  ;;  %v209_v51 = vadd.f32 0.014752088, %v208_v45 }
  0xbd   :  { %v199_v52 = vmul.f32 %v198_v46, %v953_v28  ;;  %v356_v53 = vadd.f32 0.00028619796, %v355_v47  ;;  %v235_v54 = vmul.f32 2.1237322e-06, %v978_v48  ;;  %v986_v56 = vmul.f32 0.70710677, %v981_v49 }
  0xbe   :  { %v989_v57 = vadd.f32 %v943_v20, %v162_v50  ;;  %v210_v58 = vmul.f32 %v209_v51, %v953_v28  ;;  %v246_v36 = vmul.f32 3.8918573e-05, %v978_v48  ;;  %v366_v46 = vmul.f32 3.8918573e-05, %v972_v41 }
  0xbf   :  { %v357_v59 = vmul.f32 %v356_v53, %v972_v41  ;;  %v236_v60 = vadd.f32 0.00028619796, %v235_v54  ;;  %v393_v61 = vmul.f32 %v986_v56, %v986_v56  ;;  %v200_v0 = vadd.f32 0.05243302, %v199_v52 }
  0xc0   :  { %v996_v62 = vmul.f32 0.70710677, %v989_v57  ;;  %v211_v63 = vadd.f32 0.112945676, %v210_v58  ;;  %v247_v54 = vadd.f32 0.001143296, %v246_v36 }
  0xc1   :  { %v237_v1 = vmul.f32 %v236_v60, %v978_v48  ;;  %v999_v3 = vmin.f32 %v393_v61, 16.0  ;;  %v358_v7 = vadd.f32 0.0036580483, %v357_v59  ;;  %v201_v13 = vmul.f32 %v200_v0, %v953_v28 }
  0xc2   :  { %v273_v4 = vmul.f32 %v996_v62, %v996_v62  ;;  %v172_v5 = vpop.f32.mrf.mxu2  ;;  %v212_v6 = vmul.f32 %v211_v63, %v953_v28  ;;  %v367_v60 = vadd.f32 0.001143296, %v366_v46  ;;  %v248_v2 = vmul.f32 %v247_v54, %v978_v48 }
  0xc3   :  { %v1005_v8 = vadd.f32 %v943_v20, %v172_v5  ;;  %v395_v9 = vmul.f32 2.1237322e-06, %v999_v3  ;;  %v238_v14 = vadd.f32 0.0036580483, %v237_v1  ;;  %v359_v23 = vmul.f32 %v358_v7, %v972_v41 }
  0xc4   :  { %v1008_v10 = vmin.f32 %v273_v4, 16.0  ;;  %v164_v11 = vpop.f32.mrf.mxu0  ;;  %v213_v12 = vadd.f32 0.4994258, %v212_v6  ;;  %v202_v31 = vadd.f32 0.18741608, %v201_v13 }
  0xc5   :  { %v396_v16 = vadd.f32 0.00028619796, %v395_v9  ;;  %v1013_v18 = vmul.f32 0.70710677, %v1005_v8  ;;  %v1016_v19 = vadd.f32 %v943_v20, %v164_v11  ;;  %v239_v34 = vmul.f32 %v238_v14, %v978_v48 }
  0xc6   :  { %v275_v17 = vmul.f32 2.1237322e-06, %v1008_v10  ;;  %v214_v21 = vmul.f32 %v213_v12, %v953_v28  ;;  %v360_v47 = vadd.f32 0.05243302, %v359_v23  ;;  %v203_v55 = vmul.f32 %v202_v31, %v953_v28 }
  0xc7   :  { %v397_v25 = vmul.f32 %v396_v16, %v999_v3  ;;  %v433_v27 = vmul.f32 %v1013_v18, %v1013_v18  ;;  %v1025_v35 = vmul.f32 0.70710677, %v1016_v19  ;;  %v240_v51 = vadd.f32 0.05243302, %v239_v34 }
  0xc8   :  { %v276_v26 = vadd.f32 0.00028619796, %v275_v17  ;;  %v1031_v43 = vadd.f32 1.0, %v214_v21  ;;  %v361_v61 = vmul.f32 %v360_v47, %v972_v41  ;;  %v204_v5 = vadd.f32 1.1283791, %v203_v55 }
  0xc9   :  { %v398_v37 = vadd.f32 0.0036580483, %v397_v25  ;;  %v1029_v40 = vmin.f32 %v433_v27, 16.0  ;;  %v313_v44 = vmul.f32 %v1025_v35, %v1025_v35  ;;  %v241_v0 = vmul.f32 %v240_v51, %v978_v48 }
  0xca   :  { %v277_v39 = vmul.f32 %v276_v26, %v1008_v10  ;;  %v174_v42 = vpop.f32.mrf.mxu2  ;;  %772 = vrcp.f32 %v1031_v43  ;;  %v368_v11 = vmul.f32 %v367_v60, %v972_v41  ;;  %v362_v12 = vadd.f32 0.18741608, %v361_v61 }
  0xcb   :  { %v1036_v45 = vadd.f32 %v943_v20, %v174_v42  ;;  %v435_v50 = vmul.f32 2.1237322e-06, %v1029_v40  ;;  %v399_v52 = vmul.f32 %v398_v37, %v999_v3  ;;  %v1042_v53 = vmin.f32 %v313_v44, 16.0 }
  0xcc   :  { %v278_v58 = vadd.f32 0.0036580483, %v277_v39  ;;  %v242_v14 = vadd.f32 0.18741608, %v241_v0  ;;  %v249_v17 = vadd.f32 0.014752088, %v248_v2  ;;  %v205_v21 = vmul.f32 %v204_v5, %v949_v24 }
  0xcd   :  { %v436_v20 = vadd.f32 0.00028619796, %v435_v50  ;;  %v1046_v59 = vmul.f32 0.70710677, %v1036_v45  ;;  %v315_v63 = vmul.f32 2.1237322e-06, %v1042_v53  ;;  %vm221_vm1 = vweird.f32 %v1031_v43 }
  0xce   :  { %v400_v1 = vadd.f32 0.05243302, %v399_v52  ;;  %v279_v6 = vmul.f32 %v278_v58, %v1008_v10  ;;  %v250_v30 = vmul.f32 %v249_v17, %v978_v48  ;;  %v369_v31 = vadd.f32 0.014752088, %v368_v11 }
  0xcf   :  { %v437_v28 = vmul.f32 %v436_v20, %v1029_v40  ;;  %v473_v7 = vmul.f32 %v1046_v59, %v1046_v59  ;;  %v316_v13 = vadd.f32 0.00028619796, %v315_v63  ;;  %v225_v36 = vand.u32 2147483647, %v1031_v43 }
  0xd0   :  { %v773_v4 = vpop.eup %772  ;;  %v401_v15 = vmul.f32 %v400_v1, %v999_v3  ;;  %v280_v23 = vadd.f32 0.05243302, %v279_v6  ;;  %v227_v37 = vand.u32 2147483648, %v1031_v43  ;;  %v251_v24 = vadd.f32 0.112945676, %v250_v30 }
  0xd1   :  { %v217_v9 = vmul.f32 %v773_v4, %v1031_v43  ;;  %v438_v25 = vadd.f32 0.0036580483, %v437_v28  ;;  %v1060_v26 = vmin.f32 %v473_v7, 16.0  ;;  %vm222_vm0 = vweird.f32 %v773_v4 }
  0xd2   :  { %v317_v34 = vmul.f32 %v316_v13, %v1042_v53  ;;  %v402_v39 = vadd.f32 0.18741608, %v401_v15  ;;  %v370_v44 = vmul.f32 %v369_v31, %v972_v41  ;;  %v363_v46 = vmul.f32 %v362_v12, %v972_v41  ;;  %vm1071_vm2 = vmor %vm221_vm1, %vm222_vm0 }
  0xd3   :  { %v218_v16 = vsub.f32 1.0, %v217_v9  ;;  %v281_v47 = vmul.f32 %v280_v23, %v1008_v10  ;;  %v439_v50 = vmul.f32 %v438_v25, %v1029_v40  ;;  %v406_v52 = vmul.f32 3.8918573e-05, %v999_v3 }
  0xd4   :  { %v475_v54 = vmul.f32 2.1237322e-06, %v1060_v26  ;;  %v252_v55 = vmul.f32 %v251_v24, %v978_v48  ;;  %v371_v58 = vadd.f32 0.112945676, %v370_v44  ;;  %v243_v20 = vmul.f32 %v242_v14, %v978_v48 }
  0xd5   :  { %v219_v27 = vmul.f32 %v773_v4, %v218_v16  ;;  %v318_v60 = vadd.f32 0.0036580483, %v317_v34  ;;  %v228_v61 = vor.u32 1.1754944e-38, %v227_v37  ;;  %v407_v63 = vadd.f32 0.001143296, %v406_v52 }
  0xd6   :  { %v403_v0 = vmul.f32 %v402_v39, %v999_v3  ;;  %vm226_vm3 = vcmp.eq.f32.partialorder %v225_v36, 8.507059e+37  ;;  %v253_v1 = vadd.f32 0.4994258, %v252_v55  ;;  %v372_v2 = vmul.f32 %v371_v58, %v972_v41 }
  0xd7   :  { %v220_v42 = vadd.f32 %v773_v4, %v219_v27  ;;  %v282_v5 = vadd.f32 0.18741608, %v281_v47  ;;  %v408_v28 = vmul.f32 %v407_v63, %v999_v3  ;;  %v440_v7 = vadd.f32 0.05243302, %v439_v50 }
  0xd8   :  { %v476_v9 = vadd.f32 0.00028619796, %v475_v54  ;;  %v254_v11 = vmul.f32 %v253_v1, %v978_v48  ;;  %v373_v12 = vadd.f32 0.4994258, %v372_v2  ;;  %v1087_v13 = vmul.f32 0.5, %v946_v22 }
  0xd9   :  { %v224_v43 = vsel %vm1071_vm2, %v773_v4, %v220_v42  ;;  %v286_v4 = vmul.f32 3.8918573e-05, %v1008_v10  ;;  %v319_v14 = vmul.f32 %v318_v60, %v1042_v53  ;;  %v409_v15 = vadd.f32 0.014752088, %v408_v28 }
  0xda   :  { %v229_v6 = vsel %vm226_vm3, %v228_v61, %v224_v43  ;;  %v364_v17 = vadd.f32 1.1283791, %v363_v46  ;;  %v1090_v25 = vadd.f32 1.0, %v254_v11  ;;  %v374_v27 = vmul.f32 %v373_v12, %v972_v41 }
  0xdb   :  { %v287_v16 = vadd.f32 0.001143296, %v286_v4  ;;  %v230_v23 = vmul.f32 %v229_v6, %v205_v21  ;;  %v244_v30 = vadd.f32 1.1283791, %v243_v20  ;;  %v283_v31 = vmul.f32 %v282_v5, %v1008_v10 }
  0xdc   :  { %v410_v34 = vmul.f32 %v409_v15, %v999_v3  ;;  %v404_v36 = vadd.f32 1.1283791, %v403_v0  ;;  %v441_v22 = vmul.f32 %v440_v7, %v1029_v40  ;;  %v477_v37 = vmul.f32 %v476_v9, %v1060_v26 }
  0xdd   :  { %v288_v48 = vmul.f32 %v287_v16, %v1008_v10  ;;  %774 = vrcp.f32 %v1090_v25  ;;  %v1100_v21 = vmul.f32 0.5, %v956_v29  ;;  %v320_v39 = vadd.f32 0.05243302, %v319_v14 }
  0xde   :  { %v1102_v42 = vadd.f32 1.0, %v374_v27  ;;  %v326_v41 = vmul.f32 3.8918573e-05, %v1042_v53  ;;  %v1106_v24 = vmul.f32 0.5, %v963_v33  ;;  %v690_v44 = vclamps-f32 %v230_v23, 1.0 }
  0xdf   :  { %v411_v46 = vadd.f32 0.112945676, %v410_v34  ;;  %v289_v47 = vadd.f32 0.014752088, %v288_v48  ;;  %v1109_v50 = vmul.f32 %v364_v17, %v960_v32  ;;  %v245_v51 = vmul.f32 %v244_v30, %v969_v38 }
  0xe0   :  { %v1112_v52 = vadd.f32 1.1283791, %v283_v31  ;;  %776 = vrcp.f32 %v1102_v42  ;;  %v1115_v29 = vadd.f32 0.18741608, %v441_v22  ;;  %v1117_v54 = vadd.f32 0.0036580483, %v477_v37 }
  0xe1   :  { %v412_v43 = vmul.f32 %v411_v46, %v999_v3  ;;  %v290_v33 = vmul.f32 %v289_v47, %v1008_v10  ;;  %v1122_v55 = vmul.f32 %v404_v36, %v986_v56  ;;  %v327_v58 = vadd.f32 0.001143296, %v326_v41 }
  0xe2   :  { %v446_v32 = vmul.f32 3.8918573e-05, %v1029_v40  ;;  %v486_v38 = vmul.f32 3.8918573e-05, %v1060_v26  ;;  %v321_v60 = vmul.f32 %v320_v39, %v1042_v53  ;;  %v513_v61 = vadd.f32 1.0, %v690_v44 }
  0xe3   :  { %v775_v20 = vpop.eup %774  ;;  %v413_v63 = vadd.f32 0.4994258, %v412_v43  ;;  %v291_v0 = vadd.f32 0.112945676, %v290_v33  ;;  %vm261_vm4 = vweird.f32 %v1090_v25  ;;  %v328_v2 = vmul.f32 %v327_v58, %v1042_v53 }
  0xe4   :  { %v257_v1 = vmul.f32 %v775_v20, %v1090_v25  ;;  %v447_v5 = vadd.f32 0.001143296, %v446_v32  ;;  %v267_v56 = vand.u32 2147483648, %v1090_v25  ;;  %v487_v4 = vadd.f32 0.001143296, %v486_v38 }
  0xe5   :  { %v414_v6 = vmul.f32 %v413_v63, %v999_v3  ;;  %v292_v28 = vmul.f32 %v291_v0, %v1008_v10  ;;  %v265_v11 = vand.u32 2147483647, %v1090_v25  ;;  %v329_v12 = vadd.f32 0.014752088, %v328_v2 }
  0xe6   :  { %v777_v7 = vpop.eup %776  ;;  %v258_v9 = vsub.f32 1.0, %v257_v1  ;;  %v448_v14 = vmul.f32 %v447_v5, %v1029_v40  ;;  %vm262_vm5 = vweird.f32 %v775_v20  ;;  %v488_v30 = vmul.f32 %v487_v4, %v1060_v26 }
  0xe7   :  { %v377_v15 = vmul.f32 %v777_v7, %v1102_v42  ;;  %v1136_v16 = vadd.f32 1.0, %v414_v6  ;;  %v293_v17 = vadd.f32 0.4994258, %v292_v28  ;;  %v330_v27 = vmul.f32 %v329_v12, %v1042_v53  ;;  %vm263_vm6 = vmor %vm261_vm4, %vm262_vm5 }
  0xe8   :  { %v259_v23 = vmul.f32 %v775_v20, %v258_v9  ;;  %v449_v3 = vadd.f32 0.014752088, %v448_v14  ;;  %v268_v31 = vor.u32 1.1754944e-38, %v267_v56  ;;  %v385_v48 = vand.u32 2147483647, %v1102_v42 }
  0xe9   :  { %v378_v34 = vsub.f32 1.0, %v377_v15  ;;  %778 = vrcp.f32 %v1136_v16  ;;  %v387_v22 = vand.u32 2147483648, %v1102_v42  ;;  %v294_v37 = vmul.f32 %v293_v17, %v1008_v10 }
  0xea   :  { %v260_v36 = vadd.f32 %v775_v20, %v259_v23  ;;  %v331_v39 = vadd.f32 0.112945676, %v330_v27  ;;  %vm382_vm7 = vweird.f32 %v777_v7  ;;  %v450_v44 = vmul.f32 %v449_v3, %v1029_v40 }
  0xeb   :  { %v379_v41 = vmul.f32 %v777_v7, %v378_v34  ;;  %v489_v46 = vadd.f32 0.014752088, %v488_v30  ;;  %vm266_vm8 = vcmp.eq.f32.partialorder %v265_v11, 8.507059e+37  ;;  %v1148_v43 = vadd.f32 1.0, %v294_v37 }
  0xec   :  { %v264_v47 = vsel %vm263_vm6, %v775_v20, %v260_v36  ;;  %v332_v33 = vmul.f32 %v331_v39, %v1042_v53  ;;  %vm381_vm9 = vweird.f32 %v1102_v42  ;;  %v451_v10 = vadd.f32 0.112945676, %v450_v44 }
  0xed   :  { %v269_v58 = vsel %vm266_vm8, %v268_v31, %v264_v47  ;;  %v380_v32 = vadd.f32 %v777_v7, %v379_v41  ;;  %vm383_vm10 = vmor %vm381_vm9, %vm382_vm7  ;;  %v388_v25 = vor.u32 1.1754944e-38, %v387_v22  ;;  %780 = vrcp.f32 %v1148_v43 }
  0xee   :  { %v270_v38 = vmul.f32 %v269_v58, %v245_v51  ;;  %v490_v63 = vmul.f32 %v489_v46, %v1060_v26  ;;  %vm386_vm11 = vcmp.eq.f32.partialorder %v385_v48, 8.507059e+37  ;;  %v333_v20 = vadd.f32 0.4994258, %v332_v33 }
  0xef   :  { %v779_v0 = vpop.eup %778  ;;  %v384_v1 = vsel %vm383_vm10, %v777_v7, %v380_v32  ;;  %v452_v2 = vmul.f32 %v451_v10, %v1029_v40  ;;  %v479_v5 = vmul.f32 %v1117_v54, %v1060_v26  ;;  %v322_v51 = vadd.f32 0.18741608, %v321_v60 }
  0xf0   :  { %v691_v56 = vclamps-f32 %v270_v38, 1.0  ;;  %v389_v6 = vsel %vm386_vm11, %v388_v25, %v384_v1  ;;  %v417_v42 = vmul.f32 %v779_v0, %v1136_v16  ;;  %v521_v28 = vmul.f32 %v513_v61, %v1087_v13 }
  0xf1   :  { %v425_v4 = vand.u32 2147483647, %v1136_v16  ;;  %v334_v9 = vmul.f32 %v333_v20, %v1042_v53  ;;  %v453_v12 = vadd.f32 0.4994258, %v452_v2  ;;  %v491_v14 = vadd.f32 0.112945676, %v490_v63 }
  0xf2   :  { %v514_v11 = vadd.f32 1.0, %v691_v56  ;;  %v418_v7 = vsub.f32 1.0, %v417_v42  ;;  %v390_v15 = vmul.f32 %v389_v6, %v1109_v50  ;;  %vm422_vm12 = vweird.f32 %v779_v0 }
  0xf3   :  { %v427_v54 = vand.u32 2147483648, %v1136_v16  ;;  %v1163_v17 = vadd.f32 1.0, %v334_v9  ;;  %v781_v23 = vpop.eup %780  ;;  %v454_v13 = vmul.f32 %v453_v12, %v1029_v40  ;;  %v492_v61 = vmul.f32 %v491_v14, %v1060_v26 }
  0xf4   :  { %v522_v60 = vmul.f32 %v514_v11, %v1106_v24  ;;  %v419_v27 = vmul.f32 %v779_v0, %v418_v7  ;;  %v323_v3 = vmul.f32 %v322_v51, %v1042_v53  ;;  %v480_v30 = vadd.f32 0.05243302, %v479_v5 }
  0xf5   :  { %v297_v31 = vmul.f32 %v781_v23, %v1148_v43  ;;  %782 = vrcp.f32 %v1163_v17  ;;  %vm421_vm13 = vweird.f32 %v1136_v16  ;;  %vm426_vm14 = vcmp.eq.f32.partialorder %v425_v4, 8.507059e+37 }
  0xf6   :  { %v529_v50 = vpack.c.bf16 %v522_v60, %v521_v28  ;;  %v420_v34 = vadd.f32 %v779_v0, %v419_v27  ;;  %v694_v48 = vclamps-f32 %v390_v15, 1.0  ;;  %vm423_vm15 = vmor %vm421_vm13, %vm422_vm12  ;;  %v428_v24 = vor.u32 1.1754944e-38, %v427_v54 }
  0xf7   :  { %v298_v36 = vsub.f32 1.0, %v297_v31  ;;  %v1173_v22 = vadd.f32 1.0, %v454_v13  ;;  %v305_v53 = vand.u32 2147483647, %v1148_v43  ;;  %v307_v39 = vand.u32 2147483648, %v1148_v43 }
  0xf8   :  { %609 = vmatmul.bf16.vlgmr.msra.gmra.mxu1 %v529_v50  ;;  %v424_v37 = vsel %vm423_vm15, %v779_v0, %v420_v34  ;;  %v493_v41 = vadd.f32 0.4994258, %v492_v61  ;;  %vm302_vm0 = vweird.f32 %v781_v23  ;;  %v182_v16 = vmul.f32 0.5, %v981_v49 }
  0xf9   :  { %v429_v44 = vsel %vm426_vm14, %v428_v24, %v424_v37  ;;  %v299_v46 = vmul.f32 %v781_v23, %v298_v36  ;;  %784 = vrcp.f32 %v1173_v22  ;;  %v285_v47 = vmul.f32 %v1112_v52, %v996_v62 }
  0xfa   :  { %v443_v33 = vmul.f32 %v1115_v29, %v1029_v40  ;;  %v430_v58 = vmul.f32 %v429_v44, %v1122_v55  ;;  %v517_v10 = vadd.f32 1.0, %v694_v48  ;;  %vm301_vm1 = vweird.f32 %v1148_v43 }
  0xfb   :  { %v783_v32 = vpop.eup %782  ;;  %v300_v38 = vadd.f32 %v781_v23, %v299_v46  ;;  %v494_v25 = vmul.f32 %v493_v41, %v1060_v26  ;;  %v481_v63 = vmul.f32 %v480_v30, %v1060_v26  ;;  %vm303_vm2 = vmor %vm301_vm1, %vm302_vm0  ;;  %v308_v49 = vor.u32 1.1754944e-38, %v307_v39 }
  0xfc   :  { %v695_v0 = vclamps-f32 %v430_v58, 1.0  ;;  %v337_v1 = vmul.f32 %v783_v32, %v1163_v17  ;;  %v324_v62 = vadd.f32 1.1283791, %v323_v3  ;;  %vm306_vm3 = vcmp.eq.f32.partialorder %v305_v53, 8.507059e+37 }
  0xfd   :  { %v304_v52 = vsel %vm303_vm2, %v781_v23, %v300_v38  ;;  %v1188_v40 = vadd.f32 1.0, %v494_v25  ;;  %v345_v2 = vand.u32 2147483647, %v1163_v17  ;;  %v525_v5 = vmul.f32 %v517_v10, %v1100_v21 }
  0xfe   :  { %v518_v29 = vadd.f32 1.0, %v695_v0  ;;  %v309_v55 = vsel %vm306_vm3, %v308_v49, %v304_v52  ;;  %v338_v20 = vsub.f32 1.0, %v337_v1  ;;  %vm342_vm4 = vweird.f32 %v783_v32 }
  0xff   :  { %v785_v43 = vpop.eup %784  ;;  %v347_v56 = vand.u32 2147483648, %v1163_v17  ;;  %786 = vrcp.f32 %v1188_v40  ;;  %v310_v42 = vmul.f32 %v309_v55, %v285_v47  ;;  %v444_v4 = vadd.f32 1.1283791, %v443_v33 }
 0x100   :  { %v526_v6 = vmul.f32 %v518_v29, %v182_v16  ;;  %v339_v51 = vmul.f32 %v783_v32, %v338_v20  ;;  %v457_v28 = vmul.f32 %v785_v43, %v1173_v22  ;;  %v325_v9 = vmul.f32 %v324_v62, %v1025_v35 }
 0x101   :  { %v482_v11 = vadd.f32 0.18741608, %v481_v63  ;;  %vm341_vm5 = vweird.f32 %v1163_v17  ;;  %vm346_vm7 = vcmp.eq.f32.partialorder %v345_v2, 8.507059e+37  ;;  %v348_v21 = vor.u32 1.1754944e-38, %v347_v56 }
 0x102   :  { %v531_v7 = vpack.c.bf16 %v526_v6, %v525_v5  ;;  %v340_v12 = vadd.f32 %v783_v32, %v339_v51  ;;  %v458_v14 = vsub.f32 1.0, %v457_v28  ;;  %vm343_vm6 = vmor %vm341_vm5, %vm342_vm4  ;;  %v465_v15 = vand.u32 2147483647, %v1173_v22 }
 0x103   :  { %v467_v54 = vand.u32 2147483648, %v1173_v22  ;;  %v692_v23 = vclamps-f32 %v310_v42, 1.0  ;;  %vm462_vm8 = vweird.f32 %v785_v43  ;;  %v179_v35 = vmul.f32 0.5, %v989_v57 }
 0x104   :  { %619 = vmatmul.bf16.vlgmr.msra.gmra.mxu3 %v531_v7  ;;  %v344_v60 = vsel %vm343_vm6, %v783_v32, %v340_v12  ;;  %v459_v27 = vmul.f32 %v785_v43, %v458_v14  ;;  %v483_v61 = vmul.f32 %v482_v11, %v1060_v26  ;;  %vm461_vm9 = vweird.f32 %v1173_v22 }
 0x105   :  { %v787_v13 = vpop.eup %786  ;;  %v349_v3 = vsel %vm346_vm7, %v348_v21, %v344_v60  ;;  %v445_v50 = vmul.f32 %v444_v4, %v1013_v18  ;;  %v180_v34 = vmul.f32 0.5, %v1016_v19  ;;  %vm463_vm10 = vmor %vm461_vm9, %vm462_vm8  ;;  %vm466_vm11 = vcmp.eq.f32.partialorder %v465_v15, 8.507059e+37 }
 0x106   :  { %v350_v17 = vmul.f32 %v349_v3, %v325_v9  ;;  %v460_v30 = vadd.f32 %v785_v43, %v459_v27  ;;  %v497_v31 = vmul.f32 %v787_v13, %v1188_v40  ;;  %v468_v48 = vor.u32 1.1754944e-38, %v467_v54 }
 0x107   :  { %v515_v36 = vadd.f32 1.0, %v692_v23  ;;  %v484_v53 = vadd.f32 1.1283791, %v483_v61  ;;  %v505_v39 = vand.u32 2147483647, %v1188_v40  ;;  %v507_v41 = vand.u32 2147483648, %v1188_v40 }
 0x108   :  { %v693_v24 = vclamps-f32 %v350_v17, 1.0  ;;  %v464_v37 = vsel %vm463_vm10, %v785_v43, %v460_v30  ;;  %v498_v57 = vsub.f32 1.0, %v497_v31  ;;  %vm502_vm12 = vweird.f32 %v787_v13 }
 0x109   :  { %v469_v26 = vsel %vm466_vm11, %v468_v48, %v464_v37  ;;  %v523_v18 = vmul.f32 %v515_v36, %v179_v35  ;;  %vm501_vm13 = vweird.f32 %v1188_v40  ;;  %v485_v47 = vmul.f32 %v484_v53, %v1046_v59  ;;  %v771_v59 = vld [vmem:[%s1224_s4] ss:$0 sm:$0xff]  ;;  %s897_s4 = smov [#allocation8]  }
 0x10a   :  { %v516_v22 = vadd.f32 1.0, %v693_v24  ;;  %v470_v44 = vmul.f32 %v469_v26, %v445_v50  ;;  %v499_v46 = vmul.f32 %v787_v13, %v498_v57  ;;  %vm503_vm14 = vmor %vm501_vm13, %vm502_vm12  ;;  %v508_v33 = vor.u32 1.1754944e-38, %v507_v41  ;;  %s642_s12 = sshll.u32 %s897_s4, 4  ;;  %s643_s12 = int_to_ptr.vmem [resolvable:$true] %s642_s12 }
 0x10b   :  { %vm506_vm15 = vcmp.eq.f32.partialorder %v505_v39, 8.507059e+37  ;;  %v183_v49 = vmul.f32 0.5, %v1005_v8  ;;  %v184_v1 = vmul.f32 0.5, %v1036_v45 }
 0x10c   :  { %v524_v16 = vmul.f32 %v516_v22, %v180_v34  ;;  %v500_v19 = vadd.f32 %v787_v13, %v499_v46  ;;  %v696_v32 = vclamps-f32 %v470_v44, 1.0 }
 0x10e   :  { %v530_v58 = vpack.c.bf16 %v524_v16, %v523_v18  ;;  %v504_v10 = vsel %vm503_vm14, %v787_v13, %v500_v19  ;;  %v519_v0 = vadd.f32 1.0, %v696_v32 }
 0x10f   :  { %v509_v38 = vsel %vm506_vm15, %v508_v33, %v504_v10 }
 0x110   :  { %614 = vmatmul.bf16.gmra.mxu1 %v530_v58  ;;  %v510_v25 = vmul.f32 %v509_v38, %v485_v47  ;;  %v527_v52 = vmul.f32 %v519_v0, %v183_v49 }
 0x112   :  { %v697_v63 = vclamps-f32 %v510_v25, 1.0 }
 0x114   :  { %v520_v62 = vadd.f32 1.0, %v697_v63 }
 0x116   :  { %v528_v40 = vmul.f32 %v520_v62, %v184_v1 }
 0x118   :  { %v532_v29 = vpack.c.bf16 %v528_v40, %v527_v52 }
 0x11a   :  { %624 = vmatmul.bf16.gmra.mxu3 %v532_v29 }
 0x175   :  { %v610_v55 = vpop.f32.mrf.mxu1 }
 0x176   :  { %v611_v20 = vadd.f32 %v771_v59, %v610_v55 }
 0x178   :  { %630 = vst [vmem:[#allocation8] sm:$0xff] %v611_v20 }
 0x17d   :  { %v612_v2 = vpop.f32.mrf.mxu1 }
 0x17e   :  { %v613_v43 = vadd.f32 %v771_v59, %v612_v2 }
 0x180   :  { %631 = vst [vmem:[#allocation8 + $0x8] sm:$0xff] %v613_v43 }
 0x187   :  { %v620_v5 = vpop.f32.mrf.mxu3 }
 0x188   :  { %v621_v56 = vadd.f32 %v771_v59, %v620_v5 }
 0x18a   :  { %634 = vst [vmem:[#allocation8 + $0x20] sm:$0xff] %v621_v56 }
 0x18d   :  { %v615_v8 = vpop.f32.mrf.mxu1 }
 0x18e   :  { %v616_v45 = vadd.f32 %v771_v59, %v615_v8 }
 0x18f   :  { %v622_v6 = vpop.f32.mrf.mxu3 }
 0x190   :  { %632 = vst [vmem:[#allocation8 + $0x10] sm:$0xff] %v616_v45  ;;  %v623_v42 = vadd.f32 %v771_v59, %v622_v6 }
 0x192   :  { %635 = vst [vmem:[#allocation8 + $0x28] sm:$0xff] %v623_v42 }
 0x195   :  { %v617_v51 = vpop.f32.mrf.mxu1 }
 0x196   :  { %v618_v28 = vadd.f32 %v771_v59, %v617_v51 }
 0x198   :  { %633 = vst [vmem:[#allocation8 + $0x18] sm:$0xff] %v618_v28 }
 0x19d   :  { %v625_v4 = vpop.f32.mrf.mxu3 }
 0x19e   :  { %v626_v9 = vadd.f32 %v771_v59, %v625_v4 }
 0x1a0   :  { %636 = vst [vmem:[#allocation8 + $0x30] sm:$0xff] %v626_v9 }
 0x1a5   :  { %v627_v11 = vpop.f32.mrf.mxu3 }
 0x1a6   :  { %v628_v7 = vadd.f32 %v771_v59, %v627_v11 }
 0x1a8   :  { %637 = vst [vmem:[#allocation8 + $0x38] sm:$0xff] %v628_v7 }
 0x1a9   :  { %650 = dma.vmem_to_hbm [thread:$0]  %s643_s12, 1024, %s645_s15, [#allocation4], %s894_s30, %s894_s30, %s895_s6  }
 0x1aa   :  { %888 = dma.done.wait [#allocation4], 1024  }
 0x1ab   :  { %889 = vsyncadd [#allocation4], 4294966272 }
 0x1ac   :  { %655 = vsyncpa [#allocation3], 1 }
 0x1ad   :  { %656 = vsyncpa [#allocation6], 1 }
 0x1ae   :  { %657 = vsyncpa [#allocation4], 1 }

</bundles_post_ra>
